<compile_context>
chip_gen: v7x
topology: tpu7x:2x2x1
jax: 0.10.0
libtpu: 0.0.40
codegen_flags: <defaults>
</compile_context>

<pallas_src>
import functools
import math

import jax
import jax.numpy as jnp
from jax.experimental import pallas as pl
from jax.experimental.pallas import tpu as pltpu

FEATURES = 10          # latent features
IN_DIM = 5             # observation dim
HID = 256              # hidden width
LANE = 128             # TPU lane width
LOG_2PI = math.log(2.0 * math.pi)

# Lane offsets inside the packed 128-lane output slot.
MU_OFF = 16
LV_OFF = 32
LP_OFF = 48


def _round_up(n, m):
    return ((n + m - 1) // m) * m


def _linear_vae_kernel(
    x_ref,                  # (TB, 5)   raw observations
    eps_ref,                # (TB, 10)  standard-normal noise (reparameterization)
    w1_ref, b1_ref,         # enc1: (128, 256) rows 5.. zero, (1, 256)
    w2_ref, b2_ref,         # enc2 merged: (256, 256) mu cols 0:10, log_var cols 128:138, (1, 256)
    wd1_ref, bd1_ref,       # dec1: (128, 256) rows 10.. zero, (1, 256)
    wd2_ref, bd2_ref,       # dec2: (256, 256), (1, 256)
    wd3_ref, bd3_ref,       # dec3: (256, 128) cols 5.. zero, (1, 128) cols 5.. zero
    out_ref,                # (TB, 128) packed: recon | mu@16 | log_var@32 | logp@48
    xpad_ref,               # VMEM scratch (TB, 128)
    epad_ref,               # VMEM scratch (TB, 128)
):
    # ---- lane-place the narrow inputs into 128-lane frames (VMEM scratch) ----
    xpad_ref[...] = jnp.zeros_like(xpad_ref)
    epad_ref[...] = jnp.zeros_like(epad_ref)
    xpad_ref[:, :IN_DIM] = x_ref[...]
    epad_ref[:, :FEATURES] = eps_ref[...]
    x = xpad_ref[...]                                   # (TB,128), lanes 5..  == 0
    eps = epad_ref[...]                                 # (TB,128), lanes 10.. == 0

    # ---- encoder ----
    h1 = jnp.dot(x, w1_ref[...], preferred_element_type=jnp.float32) + b1_ref[...]
    h1 = jnp.maximum(h1, 0.0)                           # relu(enc1(x))
    enc = jnp.dot(h1, w2_ref[...], preferred_element_type=jnp.float32) + b2_ref[...]
    mu = enc[:, :LANE]                                  # lanes >= FEATURES are exactly 0
    log_var = enc[:, LANE:]                             # lanes >= FEATURES are exactly 0

    # ---- reparameterize: z = mu + eps * exp(0.5*log_var) ----
    std = jnp.exp(0.5 * log_var)                        # padded lanes -> exp(0) = 1
    z = mu + eps * std                                  # padded lanes -> 0

    # ---- Normal(mu, sigma).log_prob(z).sum(1, keepdim=True) ----
    # sigma == std, log(sigma) == 0.5*log_var, (z-mu)^2/(2 sigma^2) == 0.5*eps^2
    #   => log_prob = -0.5*(eps^2 + log_var + log 2*pi)   (exact identity)
    # Padded lanes contribute eps^2 + log_var == 0, so no mask is required.
    logp = (-0.5 * jnp.sum(eps * eps + log_var, axis=1, keepdims=True)
            - 0.5 * FEATURES * LOG_2PI)                 # (TB, 1)

    # ---- decoder ----
    h3 = jnp.dot(z, wd1_ref[...], preferred_element_type=jnp.float32) + bd1_ref[...]
    h3 = jnp.maximum(h3, 0.0)
    h4 = jnp.dot(h3, wd2_ref[...], preferred_element_type=jnp.float32) + bd2_ref[...]
    h4 = jnp.maximum(h4, 0.0)
    recon = jnp.dot(h4, wd3_ref[...], preferred_element_type=jnp.float32) + bd3_ref[...]
    # recon lanes >= IN_DIM are exactly 0 (zero-padded weight cols + bias).

    # ---- pack all four results into one 128-lane slot; single full-tile store ----
    # All padded lanes are exactly zero, so rolled copies never overlap: simple sum.
    lane = jax.lax.broadcasted_iota(jnp.int32, mu.shape, dimension=1)
    packed = (recon
              + pltpu.roll(mu, MU_OFF, axis=1)          # mu -> lanes 16:26
              + pltpu.roll(log_var, LV_OFF, axis=1)     # log_var -> lanes 32:42
              + jnp.where(lane == LP_OFF, logp, 0.0))   # logp -> lane 48
    out_ref[...] = packed


def _pad_to(a, shape):
    out = jnp.zeros(shape, jnp.float32)
    return out.at[: a.shape[0], : a.shape[1]].set(a.astype(jnp.float32))


def _choose_tiling(batch, tile_b):
    """Batch tile (multiple of 8) and padded batch; >=2 grid steps when possible
    so the 'parallel' batch axis can shard over v7x's two TensorCores."""
    tb = max(8, _round_up(int(tile_b), 8))
    b8 = _round_up(batch, 8)
    tb = min(tb, b8)
    if tb == b8 and b8 >= 16:          # whole batch in one tile -> split in two
        tb = _round_up((b8 + 1) // 2, 8)
    b_pad = _round_up(batch, tb)
    return tb, b_pad


@functools.partial(jax.jit, static_argnames=("tile_b",))
def linear_vae_forward(x, eps, params, tile_b=512):
    """x: (B, 5), eps: (B, FEATURES) standard normal, params: dict of (in,out)/(1,out).

    Returns (reconstruction (B,5), mu (B,10), log_var (B,10), log_probs (B,1)).
    tile_b: batch tile; 512 is a good default on v5e/v6e/v7x (clamped for small B).
    """
    B = x.shape[0]
    tb, b_pad = _choose_tiling(B, tile_b)

    xf = x.astype(jnp.float32)
    ef = eps.astype(jnp.float32)
    if b_pad != B:
        xf = jnp.pad(xf, ((0, b_pad - B), (0, 0)))
        ef = jnp.pad(ef, ((0, b_pad - B), (0, 0)))

    # Zero-pad weights so every matmul operand/result is lane aligned and padded
    # lanes of mu / log_var / recon are exactly zero.
    w1 = _pad_to(params["w1"], (LANE, HID))                        # (5,256)  -> (128,256)
    b1 = params["b1"].astype(jnp.float32)
    w2 = jnp.zeros((HID, 2 * LANE), jnp.float32)                   # merged enc2 heads
    w2 = w2.at[:, :FEATURES].set(params["w2"][:, :FEATURES].astype(jnp.float32))
    w2 = w2.at[:, LANE:LANE + FEATURES].set(params["w2"][:, FEATURES:].astype(jnp.float32))
    b2 = jnp.zeros((1, 2 * LANE), jnp.float32)
    b2 = b2.at[:, :FEATURES].set(params["b2"][:, :FEATURES].astype(jnp.float32))
    b2 = b2.at[:, LANE:LANE + FEATURES].set(params["b2"][:, FEATURES:].astype(jnp.float32))
    wd1 = _pad_to(params["wd1"], (LANE, HID))                      # (10,256) -> (128,256)
    bd1 = params["bd1"].astype(jnp.float32)
    wd2 = params["wd2"].astype(jnp.float32)
    bd2 = params["bd2"].astype(jnp.float32)
    wd3 = _pad_to(params["wd3"], (HID, LANE))                      # (256,5)  -> (256,128)
    bd3 = _pad_to(params["bd3"], (1, LANE))

    weights = (w1, b1, w2, b2, wd1, bd1, wd2, bd2, wd3, bd3)

    grid = (b_pad // tb,)
    in_specs = [pl.BlockSpec((tb, IN_DIM), lambda i: (i, 0)),      # x: full last dim (5)
                pl.BlockSpec((tb, FEATURES), lambda i: (i, 0))]    # eps: full last dim (10)
    in_specs += [pl.BlockSpec(w.shape, lambda i: (0, 0)) for w in weights]  # VMEM-resident
    out_spec = pl.BlockSpec((tb, LANE), lambda i: (i, 0))          # single packed slab

    out = pl.pallas_call(
        _linear_vae_kernel,
        out_shape=jax.ShapeDtypeStruct((b_pad, LANE), jnp.float32),
        grid=grid,
        in_specs=in_specs,
        out_specs=out_spec,
        scratch_shapes=[pltpu.VMEM((tb, LANE), jnp.float32),
                        pltpu.VMEM((tb, LANE), jnp.float32)],
        compiler_params=pltpu.CompilerParams(
            dimension_semantics=("parallel",),        # batch axis -> v7x megacore
            vmem_limit_bytes=32 * 1024 * 1024),
    )(xf, ef, *weights)

    recon = out[:B, 0:IN_DIM]
    mu = out[:B, MU_OFF:MU_OFF + FEATURES]
    log_var = out[:B, LV_OFF:LV_OFF + FEATURES]
    logp = out[:B, LP_OFF:LP_OFF + 1]
    return recon, mu, log_var, logp


def _init_linear(key, fan_in, fan_out):
    """PyTorch nn.Linear default init: U(-1/sqrt(fan_in), 1/sqrt(fan_in)).
    Weight stored as (in, out) so y = x @ W + b matches x @ W_pt.T + b."""
    kw, kb = jax.random.split(key)
    bound = 1.0 / math.sqrt(fan_in)
    w = jax.random.uniform(kw, (fan_in, fan_out), jnp.float32, -bound, bound)
    b = jax.random.uniform(kb, (1, fan_out), jnp.float32, -bound, bound)
    return w, b


def make_params(key):
    k1, k2, k3, k4, k5 = jax.random.split(key, 5)
    w1, b1 = _init_linear(k1, IN_DIM, HID)             # enc1
    w2, b2 = _init_linear(k2, HID, 2 * FEATURES)       # enc2
    wd1, bd1 = _init_linear(k3, FEATURES, HID)         # dec1
    wd2, bd2 = _init_linear(k4, HID, HID)              # dec2
    wd3, bd3 = _init_linear(k5, HID, IN_DIM)           # dec3
    return dict(w1=w1, b1=b1, w2=w2, b2=b2,
                wd1=wd1, bd1=bd1, wd2=wd2, bd2=bd2, wd3=wd3, bd3=bd3)


def reference_forward(x, eps, p):
    """Plain-JAX reference mirroring the PyTorch forward exactly (unsimplified)."""
    h1 = jnp.maximum(x @ p["w1"] + p["b1"], 0.0)
    enc2 = h1 @ p["w2"] + p["b2"]
    mu, log_var = enc2[:, :FEATURES], enc2[:, FEATURES:]
    std = jnp.exp(0.5 * log_var)
    z = mu + eps * std
    sigma = jnp.sqrt(jnp.exp(log_var))
    log_prob = -((z - mu) ** 2) / (2 * sigma ** 2) - jnp.log(sigma) - 0.5 * LOG_2PI
    logp = jnp.sum(log_prob, axis=1, keepdims=True)
    h3 = jnp.maximum(z @ p["wd1"] + p["bd1"], 0.0)
    h4 = jnp.maximum(h3 @ p["wd2"] + p["bd2"], 0.0)
    recon = h4 @ p["wd3"] + p["bd3"]
    return recon, mu, log_var, logp


if __name__ == "__main__":
    key = jax.random.PRNGKey(0)
    kx, keps, kparams = jax.random.split(key, 3)

    # Small demo shapes; B=20 with the default tile exercises the multi-step
    # batch grid (split into 2 steps of 16) plus the batch-padding path.
    B = 20
    x = jax.random.normal(kx, (B, IN_DIM), jnp.float32)
    eps = jax.random.normal(keps, (B, FEATURES), jnp.float32)   # torch.randn_like(std)
    params = make_params(kparams)

    outs = linear_vae_forward(x, eps, params)
    outs = jax.block_until_ready(outs)
    refs = reference_forward(x, eps, params)

    names = ("reconstruction", "mu", "log_var", "log_probs")
    for n, o, r in zip(names, outs, refs):
        assert o.shape == r.shape and o.dtype == r.dtype, n
        # log_prob uses the exact algebraic simplification; rounding differs only
        # at ulp level, so allow a tight-but-not-bitwise tolerance.
        assert jnp.allclose(o, r, rtol=1e-4, atol=1e-5), f"mismatch vs reference: {n}"

    print("KERNEL_OK")
</pallas_src>

<mosaic_0001>
module attributes {stable_mosaic.version = 11 : i64} {
  func.func @_linear_vae_kernel(%arg0: i32, %arg1: memref<16x5xf32, #tpu.memory_space<vmem>>, %arg2: memref<16x10xf32, #tpu.memory_space<vmem>>, %arg3: memref<128x256xf32, #tpu.memory_space<vmem>>, %arg4: memref<1x256xf32, #tpu.memory_space<vmem>>, %arg5: memref<256x256xf32, #tpu.memory_space<vmem>>, %arg6: memref<1x256xf32, #tpu.memory_space<vmem>>, %arg7: memref<128x256xf32, #tpu.memory_space<vmem>>, %arg8: memref<1x256xf32, #tpu.memory_space<vmem>>, %arg9: memref<256x256xf32, #tpu.memory_space<vmem>>, %arg10: memref<1x256xf32, #tpu.memory_space<vmem>>, %arg11: memref<256x128xf32, #tpu.memory_space<vmem>>, %arg12: memref<1x128xf32, #tpu.memory_space<vmem>>, %arg13: memref<16x128xf32, #tpu.memory_space<vmem>>, %arg14: memref<16x128xf32, #tpu.memory_space<vmem>>, %arg15: memref<16x128xf32, #tpu.memory_space<vmem>>) attributes {dimension_semantics = [#tpu.dimension_semantics<parallel>], iteration_bounds = array<i64: 2>, scalar_prefetch = 0 : i64, scratch_operands = 2 : i64, tpu.core_type = #tpu.core_type<tc>, window_params = [{transform_indices = @transform_0, window_bounds = array<i64: 16, 5>}, {transform_indices = @transform_1, window_bounds = array<i64: 16, 10>}, {pipeline_mode = #tpu.pipeline_mode<synchronous>, transform_indices = @transform_2, window_bounds = array<i64: 128, 256>}, {pipeline_mode = #tpu.pipeline_mode<synchronous>, transform_indices = @transform_3, window_bounds = array<i64: 1, 256>}, {pipeline_mode = #tpu.pipeline_mode<synchronous>, transform_indices = @transform_4, window_bounds = array<i64: 256, 256>}, {pipeline_mode = #tpu.pipeline_mode<synchronous>, transform_indices = @transform_5, window_bounds = array<i64: 1, 256>}, {pipeline_mode = #tpu.pipeline_mode<synchronous>, transform_indices = @transform_6, window_bounds = array<i64: 128, 256>}, {pipeline_mode = #tpu.pipeline_mode<synchronous>, transform_indices = @transform_7, window_bounds = array<i64: 1, 256>}, {pipeline_mode = #tpu.pipeline_mode<synchronous>, transform_indices = @transform_8, window_bounds = array<i64: 256, 256>}, {pipeline_mode = #tpu.pipeline_mode<synchronous>, transform_indices = @transform_9, window_bounds = array<i64: 1, 256>}, {pipeline_mode = #tpu.pipeline_mode<synchronous>, transform_indices = @transform_10, window_bounds = array<i64: 256, 128>}, {pipeline_mode = #tpu.pipeline_mode<synchronous>, transform_indices = @transform_11, window_bounds = array<i64: 1, 128>}, {transform_indices = @transform_12, window_bounds = array<i64: 16, 128>}]} {
    %cst = arith.constant 0.000000e+00 : f32
    %0 = vector.broadcast %cst : f32 to vector<16x128xf32>
    %c0 = arith.constant 0 : index
    %c0_0 = arith.constant 0 : index
    %1 = vector.load %arg14[%c0, %c0_0] : memref<16x128xf32, #tpu.memory_space<vmem>>, vector<16x128xf32>
    tpu.vector_store %arg14[%c0, %c0_0], %0 {strides = array<i32>} : memref<16x128xf32, #tpu.memory_space<vmem>>, vector<16x128xf32>,
    %cst_1 = arith.constant 0.000000e+00 : f32
    %2 = vector.broadcast %cst_1 : f32 to vector<16x128xf32>
    %c0_2 = arith.constant 0 : index
    %c0_3 = arith.constant 0 : index
    %3 = vector.load %arg15[%c0_2, %c0_3] : memref<16x128xf32, #tpu.memory_space<vmem>>, vector<16x128xf32>
    tpu.vector_store %arg15[%c0_2, %c0_3], %2 {strides = array<i32>} : memref<16x128xf32, #tpu.memory_space<vmem>>, vector<16x128xf32>,
    %c0_4 = arith.constant 0 : index
    %c0_5 = arith.constant 0 : index
    %4 = vector.load %arg1[%c0_4, %c0_5] : memref<16x5xf32, #tpu.memory_space<vmem>>, vector<16x5xf32>
    %c0_6 = arith.constant 0 : index
    %c0_7 = arith.constant 0 : index
    %5 = vector.load %arg14[%c0_6, %c0_7] : memref<16x128xf32, #tpu.memory_space<vmem>>, vector<16x5xf32>
    tpu.vector_store %arg14[%c0_6, %c0_7], %4 {strides = array<i32>} : memref<16x128xf32, #tpu.memory_space<vmem>>, vector<16x5xf32>,
    %c0_8 = arith.constant 0 : index
    %c0_9 = arith.constant 0 : index
    %6 = vector.load %arg2[%c0_8, %c0_9] : memref<16x10xf32, #tpu.memory_space<vmem>>, vector<16x10xf32>
    %c0_10 = arith.constant 0 : index
    %c0_11 = arith.constant 0 : index
    %7 = vector.load %arg15[%c0_10, %c0_11] : memref<16x128xf32, #tpu.memory_space<vmem>>, vector<16x10xf32>
    tpu.vector_store %arg15[%c0_10, %c0_11], %6 {strides = array<i32>} : memref<16x128xf32, #tpu.memory_space<vmem>>, vector<16x10xf32>,
    %c0_12 = arith.constant 0 : index
    %c0_13 = arith.constant 0 : index
    %8 = vector.load %arg14[%c0_12, %c0_13] : memref<16x128xf32, #tpu.memory_space<vmem>>, vector<16x128xf32>
    %c0_14 = arith.constant 0 : index
    %c0_15 = arith.constant 0 : index
    %9 = vector.load %arg15[%c0_14, %c0_15] : memref<16x128xf32, #tpu.memory_space<vmem>>, vector<16x128xf32>
    %c0_16 = arith.constant 0 : index
    %c0_17 = arith.constant 0 : index
    %10 = vector.load %arg3[%c0_16, %c0_17] : memref<128x256xf32, #tpu.memory_space<vmem>>, vector<128x256xf32>
    %cst_18 = arith.constant dense<0.000000e+00> : vector<16x256xf32>
    %11 = tpu.matmul %8, %10, %cst_18 {dimension_numbers = #tpu.dot_dimension_numbers<[1], [0], [0], [1], [0, 0, 1, 1], [], []>} : vector<16x128xf32>, vector<128x256xf32>, vector<16x256xf32> -> vector<16x256xf32>
    %c0_19 = arith.constant 0 : index
    %c0_20 = arith.constant 0 : index
    %12 = vector.load %arg4[%c0_19, %c0_20] : memref<1x256xf32, #tpu.memory_space<vmem>>, vector<1x256xf32>
    %13 = vector.broadcast %12 : vector<1x256xf32> to vector<16x256xf32>
    %14 = arith.addf %11, %13 : vector<16x256xf32>
    %cst_21 = arith.constant 0.000000e+00 : f32
    %15 = vector.broadcast %cst_21 : f32 to vector<16x256xf32>
    %16 = arith.maximumf %14, %15 : vector<16x256xf32>
    %c0_22 = arith.constant 0 : index
    %c0_23 = arith.constant 0 : index
    %17 = vector.load %arg5[%c0_22, %c0_23] : memref<256x256xf32, #tpu.memory_space<vmem>>, vector<256x256xf32>
    %cst_24 = arith.constant dense<0.000000e+00> : vector<16x256xf32>
    %18 = tpu.matmul %16, %17, %cst_24 {dimension_numbers = #tpu.dot_dimension_numbers<[1], [0], [0], [1], [0, 0, 1, 1], [], []>} : vector<16x256xf32>, vector<256x256xf32>, vector<16x256xf32> -> vector<16x256xf32>
    %c0_25 = arith.constant 0 : index
    %c0_26 = arith.constant 0 : index
    %19 = vector.load %arg6[%c0_25, %c0_26] : memref<1x256xf32, #tpu.memory_space<vmem>>, vector<1x256xf32>
    %20 = vector.broadcast %19 : vector<1x256xf32> to vector<16x256xf32>
    %21 = arith.addf %18, %20 : vector<16x256xf32>
    %22 = vector.extract_strided_slice %21 {offsets = [0, 0], sizes = [16, 128], strides = [1, 1]} : vector<16x256xf32> to vector<16x128xf32>
    %23 = vector.extract_strided_slice %21 {offsets = [0, 128], sizes = [16, 128], strides = [1, 1]} : vector<16x256xf32> to vector<16x128xf32>
    %cst_27 = arith.constant 5.000000e-01 : f32
    %24 = vector.broadcast %cst_27 : f32 to vector<16x128xf32>
    %25 = arith.mulf %24, %23 : vector<16x128xf32>
    %26 = math.exp %25 : vector<16x128xf32>
    %27 = arith.mulf %9, %26 : vector<16x128xf32>
    %28 = arith.addf %22, %27 : vector<16x128xf32>
    %29 = arith.mulf %9, %9 : vector<16x128xf32>
    %30 = arith.addf %29, %23 : vector<16x128xf32>
    %cst_28 = arith.constant dense<0.000000e+00> : vector<16xf32>
    %31 = vector.multi_reduction <add>, %30, %cst_28 [1] : vector<16x128xf32> to vector<16xf32>
    %32 = vector.shape_cast %31 : vector<16xf32> to vector<16x1xf32>
    %cst_29 = arith.constant -5.000000e-01 : f32
    %33 = vector.broadcast %cst_29 : f32 to vector<16x1xf32>
    %34 = arith.mulf %33, %32 : vector<16x1xf32>
    %cst_30 = arith.constant 9.18938541 : f32
    %35 = vector.broadcast %cst_30 : f32 to vector<16x1xf32>
    %36 = arith.subf %34, %35 : vector<16x1xf32>
    %c0_31 = arith.constant 0 : index
    %c0_32 = arith.constant 0 : index
    %37 = vector.load %arg7[%c0_31, %c0_32] : memref<128x256xf32, #tpu.memory_space<vmem>>, vector<128x256xf32>
    %cst_33 = arith.constant dense<0.000000e+00> : vector<16x256xf32>
    %38 = tpu.matmul %28, %37, %cst_33 {dimension_numbers = #tpu.dot_dimension_numbers<[1], [0], [0], [1], [0, 0, 1, 1], [], []>} : vector<16x128xf32>, vector<128x256xf32>, vector<16x256xf32> -> vector<16x256xf32>
    %c0_34 = arith.constant 0 : index
    %c0_35 = arith.constant 0 : index
    %39 = vector.load %arg8[%c0_34, %c0_35] : memref<1x256xf32, #tpu.memory_space<vmem>>, vector<1x256xf32>
    %40 = vector.broadcast %39 : vector<1x256xf32> to vector<16x256xf32>
    %41 = arith.addf %38, %40 : vector<16x256xf32>
    %cst_36 = arith.constant 0.000000e+00 : f32
    %42 = vector.broadcast %cst_36 : f32 to vector<16x256xf32>
    %43 = arith.maximumf %41, %42 : vector<16x256xf32>
    %c0_37 = arith.constant 0 : index
    %c0_38 = arith.constant 0 : index
    %44 = vector.load %arg9[%c0_37, %c0_38] : memref<256x256xf32, #tpu.memory_space<vmem>>, vector<256x256xf32>
    %cst_39 = arith.constant dense<0.000000e+00> : vector<16x256xf32>
    %45 = tpu.matmul %43, %44, %cst_39 {dimension_numbers = #tpu.dot_dimension_numbers<[1], [0], [0], [1], [0, 0, 1, 1], [], []>} : vector<16x256xf32>, vector<256x256xf32>, vector<16x256xf32> -> vector<16x256xf32>
    %c0_40 = arith.constant 0 : index
    %c0_41 = arith.constant 0 : index
    %46 = vector.load %arg10[%c0_40, %c0_41] : memref<1x256xf32, #tpu.memory_space<vmem>>, vector<1x256xf32>
    %47 = vector.broadcast %46 : vector<1x256xf32> to vector<16x256xf32>
    %48 = arith.addf %45, %47 : vector<16x256xf32>
    %cst_42 = arith.constant 0.000000e+00 : f32
    %49 = vector.broadcast %cst_42 : f32 to vector<16x256xf32>
    %50 = arith.maximumf %48, %49 : vector<16x256xf32>
    %c0_43 = arith.constant 0 : index
    %c0_44 = arith.constant 0 : index
    %51 = vector.load %arg11[%c0_43, %c0_44] : memref<256x128xf32, #tpu.memory_space<vmem>>, vector<256x128xf32>
    %cst_45 = arith.constant dense<0.000000e+00> : vector<16x128xf32>
    %52 = tpu.matmul %50, %51, %cst_45 {dimension_numbers = #tpu.dot_dimension_numbers<[1], [0], [0], [1], [0, 0, 1, 1], [], []>} : vector<16x256xf32>, vector<256x128xf32>, vector<16x128xf32> -> vector<16x128xf32>
    %c0_46 = arith.constant 0 : index
    %c0_47 = arith.constant 0 : index
    %53 = vector.load %arg12[%c0_46, %c0_47] : memref<1x128xf32, #tpu.memory_space<vmem>>, vector<1x128xf32>
    %54 = vector.broadcast %53 : vector<1x128xf32> to vector<16x128xf32>
    %55 = arith.addf %52, %54 : vector<16x128xf32>
    %56 = tpu.iota {dimensions = array<i32: 1>} : vector<16x128xi32>
    %c16_i32 = arith.constant 16 : i32
    %57 = tpu.dynamic_rotate %22 by %c16_i32 dim 1 : vector<16x128xf32>, i32 -> vector<16x128xf32>
    %58 = arith.addf %55, %57 : vector<16x128xf32>
    %c32_i32 = arith.constant 32 : i32
    %59 = tpu.dynamic_rotate %23 by %c32_i32 dim 1 : vector<16x128xf32>, i32 -> vector<16x128xf32>
    %60 = arith.addf %58, %59 : vector<16x128xf32>
    %c48_i32 = arith.constant 48 : i32
    %61 = vector.broadcast %c48_i32 : i32 to vector<16x128xi32>
    %62 = arith.cmpi eq, %56, %61 : vector<16x128xi32>
    %cst_48 = arith.constant 0.000000e+00 : f32
    %63 = vector.shape_cast %36 : vector<16x1xf32> to vector<16x1xf32>
    %64 = vector.broadcast %63 : vector<16x1xf32> to vector<16x128xf32>
    %65 = vector.broadcast %cst_48 : f32 to vector<16x128xf32>
    %66 = arith.select %62, %64, %65 : vector<16x128xi1>, vector<16x128xf32>
    %67 = arith.addf %60, %66 : vector<16x128xf32>
    %c0_49 = arith.constant 0 : index
    %c0_50 = arith.constant 0 : index
    %68 = vector.load %arg13[%c0_49, %c0_50] : memref<16x128xf32, #tpu.memory_space<vmem>>, vector<16x128xf32>
    tpu.vector_store %arg13[%c0_49, %c0_50], %67 {strides = array<i32>} : memref<16x128xf32, #tpu.memory_space<vmem>>, vector<16x128xf32>,
    return
  }
  func.func @transform_0(%arg0: i32) -> (i32, i32) {
    %c0_i32 = arith.constant 0 : i32
    %c0_i32_0 = arith.constant 0 : i32
    return %arg0, %c0_i32 : i32, i32
  }
  func.func @transform_1(%arg0: i32) -> (i32, i32) {
    %c0_i32 = arith.constant 0 : i32
    %c0_i32_0 = arith.constant 0 : i32
    return %arg0, %c0_i32 : i32, i32
  }
  func.func @transform_2(%arg0: i32) -> (i32, i32) {
    %c0_i32 = arith.constant 0 : i32
    %c0_i32_0 = arith.constant 0 : i32
    %c0_i32_1 = arith.constant 0 : i32
    return %c0_i32, %c0_i32_0 : i32, i32
  }
  func.func @transform_3(%arg0: i32) -> (i32, i32) {
    %c0_i32 = arith.constant 0 : i32
    %c0_i32_0 = arith.constant 0 : i32
    %c0_i32_1 = arith.constant 0 : i32
    return %c0_i32, %c0_i32_0 : i32, i32
  }
  func.func @transform_4(%arg0: i32) -> (i32, i32) {
    %c0_i32 = arith.constant 0 : i32
    %c0_i32_0 = arith.constant 0 : i32
    %c0_i32_1 = arith.constant 0 : i32
    return %c0_i32, %c0_i32_0 : i32, i32
  }
  func.func @transform_5(%arg0: i32) -> (i32, i32) {
    %c0_i32 = arith.constant 0 : i32
    %c0_i32_0 = arith.constant 0 : i32
    %c0_i32_1 = arith.constant 0 : i32
    return %c0_i32, %c0_i32_0 : i32, i32
  }
  func.func @transform_6(%arg0: i32) -> (i32, i32) {
    %c0_i32 = arith.constant 0 : i32
    %c0_i32_0 = arith.constant 0 : i32
    %c0_i32_1 = arith.constant 0 : i32
    return %c0_i32, %c0_i32_0 : i32, i32
  }
  func.func @transform_7(%arg0: i32) -> (i32, i32) {
    %c0_i32 = arith.constant 0 : i32
    %c0_i32_0 = arith.constant 0 : i32
    %c0_i32_1 = arith.constant 0 : i32
    return %c0_i32, %c0_i32_0 : i32, i32
  }
  func.func @transform_8(%arg0: i32) -> (i32, i32) {
    %c0_i32 = arith.constant 0 : i32
    %c0_i32_0 = arith.constant 0 : i32
    %c0_i32_1 = arith.constant 0 : i32
    return %c0_i32, %c0_i32_0 : i32, i32
  }
  func.func @transform_9(%arg0: i32) -> (i32, i32) {
    %c0_i32 = arith.constant 0 : i32
    %c0_i32_0 = arith.constant 0 : i32
    %c0_i32_1 = arith.constant 0 : i32
    return %c0_i32, %c0_i32_0 : i32, i32
  }
  func.func @transform_10(%arg0: i32) -> (i32, i32) {
    %c0_i32 = arith.constant 0 : i32
    %c0_i32_0 = arith.constant 0 : i32
    %c0_i32_1 = arith.constant 0 : i32
    return %c0_i32, %c0_i32_0 : i32, i32
  }
  func.func @transform_11(%arg0: i32) -> (i32, i32) {
    %c0_i32 = arith.constant 0 : i32
    %c0_i32_0 = arith.constant 0 : i32
    %c0_i32_1 = arith.constant 0 : i32
    return %c0_i32, %c0_i32_0 : i32, i32
  }
  func.func @transform_12(%arg0: i32) -> (i32, i32) {
    %c0_i32 = arith.constant 0 : i32
    %c0_i32_0 = arith.constant 0 : i32
    return %arg0, %c0_i32 : i32, i32
  }
}

</mosaic_0001>

<bundles_post_ra>
// kernel: linear_vae_forward.1
= control target key start
LH: loop header
LB: loop body
LE: loop exit
PB: predicated region body
PF: predicated region fallthrough
CT: control target
= control target key end

     0   :  { %s1611_s21 = smov 0   ;;  %s2350_s0 = inlined_call_operand.vmem [shape: f32[32,5], index: 0, kind: input, shape index: {}]   ;;  %s2351_s1 = inlined_call_operand.vmem [shape: f32[32,10], index: 1, kind: input, shape index: {}]   ;;  %s2352_s2 = inlined_call_operand.vmem [shape: f32[128,256], index: 2, kind: input, shape index: {}]   ;;  %s2353_s3 = inlined_call_operand.vmem [shape: f32[1,256], index: 3, kind: input, shape index: {}]   ;;  %s2354_s4 = inlined_call_operand.vmem [shape: f32[256,256], index: 4, kind: input, shape index: {}]   ;;  %s2355_s5 = inlined_call_operand.vmem [shape: f32[1,256], index: 5, kind: input, shape index: {}]   ;;  %s2356_s6 = inlined_call_operand.vmem [shape: f32[128,256], index: 6, kind: input, shape index: {}]   ;;  %s2357_s7 = inlined_call_operand.vmem [shape: f32[1,256], index: 7, kind: input, shape index: {}]   ;;  %s2358_s8 = inlined_call_operand.vmem [shape: f32[256,256], index: 8, kind: input, shape index: {}]   ;;  %s2359_s9 = inlined_call_operand.vmem [shape: f32[1,256], index: 9, kind: input, shape index: {}]   ;;  %s2360_s10 = inlined_call_operand.vmem [shape: f32[256,128], index: 10, kind: input, shape index: {}]   ;;  %s2361_s11 = inlined_call_operand.vmem [shape: f32[1,128], index: 11, kind: input, shape index: {}]   ;;  %s2362_s12 = inlined_call_operand.vmem [shape: f32[32,128], index: 12, kind: output, shape index: {}]  }
   0x1 LB: > { %s1242_s22 = sadd.s32 4294967295, %s1541_s21   ;;  %p1246_p0 = scmp.ge.s32.totalorder %s1541_s21, 1  ;;  %s1541_s21 = sphi %s1611_s21, %s22_s21  }
   0x2   : > { %p374_p1 = scmp.lt.s32.totalorder %s1541_s21, 3 }
   0x4   : > { %p375_p2 = pnand %p1246_p0, %p374_p1 }
   0x5   : > { %v458_v0 = vld [vmem:[%s2352_s2 + $0x8] sm:$0xff] (!%p375_p2)  ;;  %v460_v1 = vld [vmem:[%s2352_s2 + $0x18] sm:$0xff] (!%p375_p2)  ;;  %v457_v2 = vld [vmem:[%s2352_s2] sm:$0xff] (!%p375_p2)  ;;  %s1247_s29 = sshll.u32 (!%p375_p2), %s1242_s22, 1  ;;  %v1543_v7 = vmov (!%p375_p2), 0.0   ;;  %vm450_vm0 = vcmask (!%p375_p2), 80896  }
   0x6   : > { %378 = sbr.rel (%p375_p2) target bundleno = 1156 (0x484), region = 68  ;;  %v1296_v3 = vpack.c.bf16 (!%p375_p2), %v460_v1, %v458_v0  ;;  %v459_v4 = vld [vmem:[%s2352_s2 + $0x10] sm:$0xff] (!%p375_p2)  ;;  %v462_v5 = vld [vmem:[%s2352_s2 + $0x28] sm:$0xff] (!%p375_p2)  ;;  %v464_v6 = vld [vmem:[%s2352_s2 + $0x38] sm:$0xff] (!%p375_p2)  ;;  %p422_p3 = scmp.lt.s32.totalorder (!%p375_p2), %s1247_s29, 3  ;;  %439 = vst [vmem:[#allocation2] sm:$0xff] (!%p375_p2), %v1543_v7  ;;  %565 = vmatprep.mubr.f32.mxu0 (!%p375_p2), %v1543_v7 }
   0x7   : > { %440 = vst [vmem:[#allocation2 + $0x8] sm:$0xff] (!%p375_p2), %v1543_v7  ;;  %441 = vst [vmem:[#allocation3] sm:$0xff] (!%p375_p2), %v1543_v7  ;;  %v1298_v8 = vpack.c.bf16 (!%p375_p2), %v459_v4, %v457_v2  ;;  %v1300_v9 = vpack.c.bf16 (!%p375_p2), %v464_v6, %v462_v5  ;;  %v461_v10 = vld [vmem:[%s2352_s2 + $0x20] sm:$0xff] (!%p375_p2)  ;;  %v463_v11 = vld [vmem:[%s2352_s2 + $0x30] sm:$0xff] (!%p375_p2)  ;;  %vm445_vm1 = vcmask (!%p375_p2), 39936   ;;  %s1544_s17 = smov (!%p375_p2), 16  }
   0x8   : > { %442 = vst [vmem:[#allocation3 + $0x8] sm:$0xff] (!%p375_p2), %v1543_v7  ;;  %v466_v12 = vld [vmem:[%s2352_s2 + $0x48] sm:$0xff] (!%p375_p2)  ;;  %1297 = vmatprep.subr.bf16.mxu0 (!%p375_p2), %v1296_v3  ;;  %v468_v13 = vld [vmem:[%s2352_s2 + $0x58] sm:$0xff] (!%p375_p2)  ;;  %v1302_v14 = vpack.c.bf16 (!%p375_p2), %v463_v11, %v461_v10  ;;  %v465_v16 = vld [vmem:[%s2352_s2 + $0x40] sm:$0xff] (!%p375_p2)  ;;  %s1545_s18 = smov (!%p375_p2), 32  }
   0x9   : > { %1299 = vmatpush1.bf16.msra.mxu0 (!%p375_p2), %v1298_v8  ;;  %v1304_v15 = vpack.c.bf16 (!%p375_p2), %v468_v13, %v466_v12  ;;  %v467_v17 = vld [vmem:[%s2352_s2 + $0x50] sm:$0xff] (!%p375_p2)  ;;  %v470_v18 = vld [vmem:[%s2352_s2 + $0x68] sm:$0xff] (!%p375_p2)  ;;  %v472_v19 = vld [vmem:[%s2352_s2 + $0x78] sm:$0xff] (!%p375_p2) }
   0xa   : > { %1301 = vmatprep.subr.bf16.mxu0 (!%p375_p2), %v1300_v9  ;;  %v1306_v20 = vpack.c.bf16 (!%p375_p2), %v467_v17, %v465_v16  ;;  %v1308_v21 = vpack.c.bf16 (!%p375_p2), %v472_v19, %v470_v18  ;;  %v469_v22 = vld [vmem:[%s2352_s2 + $0x60] sm:$0xff] (!%p375_p2)  ;;  %v471_v23 = vld [vmem:[%s2352_s2 + $0x70] sm:$0xff] (!%p375_p2)  ;;  %v474_v24 = vld [vmem:[%s2352_s2 + $0x88] sm:$0xff] (!%p375_p2) }
   0xb   : > { %v476_v25 = vld [vmem:[%s2352_s2 + $0x98] sm:$0xff] (!%p375_p2)  ;;  %v473_v27 = vld [vmem:[%s2352_s2 + $0x80] sm:$0xff] (!%p375_p2)  ;;  %v475_v28 = vld [vmem:[%s2352_s2 + $0x90] sm:$0xff] (!%p375_p2)  ;;  %v1310_v32 = vpack.c.bf16 (!%p375_p2), %v471_v23, %v469_v22 }
   0xc   : > { %v478_v33 = vld [vmem:[%s2352_s2 + $0xa8] sm:$0xff] (!%p375_p2)  ;;  %v480_v34 = vld [vmem:[%s2352_s2 + $0xb8] sm:$0xff] (!%p375_p2)  ;;  %v582_v37 = vld [vmem:[%s2354_s4] sm:$0xff] (!%p375_p2)  ;;  %v1312_v38 = vpack.c.bf16 (!%p375_p2), %v476_v25, %v474_v24  ;;  %v1314_v49 = vpack.c.bf16 (!%p375_p2), %v475_v28, %v473_v27 }
   0xd   : > { %s2364_s29 = smov (!%p422_p3, %s1247_s29), 3  ;;  %1303 = vmatpush1.bf16.msra.mxu0 %v1302_v14  ;;  %v583_v35 = vld [vmem:[%s2354_s4 + $0x8] sm:$0xff]  ;;  %v585_v36 = vld [vmem:[%s2354_s4 + $0x18] sm:$0xff]  ;;  %v584_v40 = vld [vmem:[%s2354_s4 + $0x10] sm:$0xff]  ;;  %v1316_v53 = vpack.c.bf16 %v480_v34, %v478_v33 }
   0xe   : > { %s1661_s14 = sshll.u32 %s2364_s29, 3  ;;  %1305 = vmatprep.subr.bf16.mxu0 %v1304_v15  ;;  %v1328_v39 = vpack.c.bf16 %v585_v36, %v583_v35  ;;  %v587_v41 = vld [vmem:[%s2354_s4 + $0x28] sm:$0xff]  ;;  %v589_v42 = vld [vmem:[%s2354_s4 + $0x38] sm:$0xff]  ;;  %v1330_v43 = vpack.c.bf16 %v584_v40, %v582_v37  ;;  %v586_v45 = vld [vmem:[%s2354_s4 + $0x20] sm:$0xff] }
   0xf   : > { %s431_s22 = scalar_lea.vmem %s2351_s1, %s1661_s14  ;;  %s425_s24 = scalar_lea.vmem %s2350_s0, %s1661_s14  ;;  %v1332_v44 = vpack.c.bf16 %v589_v42, %v587_v41  ;;  %v588_v46 = vld [vmem:[%s2354_s4 + $0x30] sm:$0xff]  ;;  %v591_v47 = vld [vmem:[%s2354_s4 + $0x48] sm:$0xff]  ;;  %v593_v48 = vld [vmem:[%s2354_s4 + $0x58] sm:$0xff] }
  0x10   : > { %v448_v26 = vld [vmem:[%s431_s22] sm:$0xff]  ;;  %v449_v29 = vld [vmem:[%s431_s22 + $0x8] sm:$0xff]  ;;  %1329 = vmatprep.subr.bf16.mxu1 %v1328_v39  ;;  %v479_v51 = vld [vmem:[%s2352_s2 + $0xb0] sm:$0xff]  ;;  %v1334_v52 = vpack.c.bf16 %v588_v46, %v586_v45  ;;  %v1336_v55 = vpack.c.bf16 %v593_v48, %v591_v47  ;;  %s437_s28 = scalar_lea.vmem %s2362_s12, %s1661_s14 }
  0x11   : > { %451 = vst.msk [vmem:[#allocation3] sm:$0xff] %vm450_vm0, %v448_v26  ;;  %v443_v30 = vld [vmem:[%s425_s24] sm:$0xff]  ;;  %v444_v31 = vld [vmem:[%s425_s24 + $0x8] sm:$0xff]  ;;  %1307 = vmatpush1.bf16.msra.mxu0 %v1306_v20  ;;  %452 = vst.msk [vmem:[#allocation3 + $0x8] sm:$0xff] %vm450_vm0, %v449_v29  ;;  %1331 = vmatpush1.bf16.msra.mxu1 %v1330_v43 }
  0x12   : > { %446 = vst.msk [vmem:[#allocation2] sm:$0xff] %vm445_vm1, %v443_v30  ;;  %447 = vst.msk [vmem:[#allocation2 + $0x8] sm:$0xff] %vm445_vm1, %v444_v31  ;;  %1309 = vmatprep.subr.bf16.mxu0 %v1308_v21  ;;  %v477_v50 = vld [vmem:[%s2352_s2 + $0xa0] sm:$0xff]  ;;  %v482_v54 = vld [vmem:[%s2352_s2 + $0xc8] sm:$0xff]  ;;  %1333 = vmatprep.subr.bf16.mxu1 %v1332_v44 }
  0x13   : > { %v590_v56 = vld [vmem:[%s2354_s4 + $0x40] sm:$0xff]  ;;  %v592_v57 = vld [vmem:[%s2354_s4 + $0x50] sm:$0xff]  ;;  %v484_v58 = vld [vmem:[%s2352_s2 + $0xd8] sm:$0xff]  ;;  %v1318_v61 = vpack.c.bf16 %v479_v51, %v477_v50 }
  0x14   : > { %v595_v59 = vld [vmem:[%s2354_s4 + $0x68] sm:$0xff]  ;;  %v597_v60 = vld [vmem:[%s2354_s4 + $0x78] sm:$0xff]  ;;  %v481_v62 = vld [vmem:[%s2352_s2 + $0xc0] sm:$0xff]  ;;  %v1338_v0 = vpack.c.bf16 %v592_v57, %v590_v56  ;;  %v1320_v1 = vpack.c.bf16 %v484_v58, %v482_v54 }
  0x15   : > { %1311 = vmatpush1.bf16.msra.mxu0 %v1310_v32  ;;  %v483_v63 = vld [vmem:[%s2352_s2 + $0xd0] sm:$0xff]  ;;  %1335 = vmatpush1.bf16.msra.mxu1 %v1334_v52  ;;  %v486_v2 = vld [vmem:[%s2352_s2 + $0xe8] sm:$0xff]  ;;  %v1340_v3 = vpack.c.bf16 %v597_v60, %v595_v59  ;;  %v594_v4 = vld [vmem:[%s2354_s4 + $0x60] sm:$0xff] }
  0x16   : > { %1313 = vmatprep.subr.bf16.mxu0 %v1312_v38  ;;  %1337 = vmatprep.subr.bf16.mxu1 %v1336_v55  ;;  %v596_v5 = vld [vmem:[%s2354_s4 + $0x70] sm:$0xff]  ;;  %v488_v6 = vld [vmem:[%s2352_s2 + $0xf8] sm:$0xff]  ;;  %v599_v8 = vld [vmem:[%s2354_s4 + $0x88] sm:$0xff]  ;;  %v1322_v10 = vpack.c.bf16 %v483_v63, %v481_v62 }
  0x17   : > { %v601_v9 = vld [vmem:[%s2354_s4 + $0x98] sm:$0xff]  ;;  %v485_v11 = vld [vmem:[%s2352_s2 + $0xe0] sm:$0xff]  ;;  %v1342_v12 = vpack.c.bf16 %v596_v5, %v594_v4  ;;  %v1324_v13 = vpack.c.bf16 %v488_v6, %v486_v2  ;;  %v487_v14 = vld [vmem:[%s2352_s2 + $0xf0] sm:$0xff] }
  0x18   : > { %v1344_v15 = vpack.c.bf16 %v601_v9, %v599_v8  ;;  %v598_v16 = vld [vmem:[%s2354_s4 + $0x80] sm:$0xff]  ;;  %v600_v17 = vld [vmem:[%s2354_s4 + $0x90] sm:$0xff]  ;;  %v603_v18 = vld [vmem:[%s2354_s4 + $0xa8] sm:$0xff]  ;;  %v1326_v20 = vpack.c.bf16 %v487_v14, %v485_v11 }
  0x19   : > { %1315 = vmatpush1.bf16.msra.mxu0 %v1314_v49  ;;  %1339 = vmatpush1.bf16.msra.mxu1 %v1338_v0  ;;  %v605_v19 = vld [vmem:[%s2354_s4 + $0xb8] sm:$0xff]  ;;  %v1346_v21 = vpack.c.bf16 %v600_v17, %v598_v16  ;;  %v602_v23 = vld [vmem:[%s2354_s4 + $0xa0] sm:$0xff]  ;;  %v604_v24 = vld [vmem:[%s2354_s4 + $0xb0] sm:$0xff] }
  0x1a   : > { %1317 = vmatprep.subr.bf16.mxu0 %v1316_v53  ;;  %1341 = vmatprep.subr.bf16.mxu1 %v1340_v3  ;;  %v1348_v22 = vpack.c.bf16 %v605_v19, %v603_v18  ;;  %v607_v25 = vld [vmem:[%s2354_s4 + $0xc8] sm:$0xff]  ;;  %v609_v26 = vld [vmem:[%s2354_s4 + $0xd8] sm:$0xff]  ;;  %v453_v27 = vld [vmem:[#allocation2] sm:$0xff]  ;;  %v1350_v28 = vpack.c.bf16 %v604_v24, %v602_v23 }
  0x1b   : > { %v1352_v29 = vpack.c.bf16 %v609_v26, %v607_v25  ;;  %v606_v30 = vld [vmem:[%s2354_s4 + $0xc0] sm:$0xff]  ;;  %v608_v31 = vld [vmem:[%s2354_s4 + $0xd0] sm:$0xff]  ;;  %v611_v32 = vld [vmem:[%s2354_s4 + $0xe8] sm:$0xff] }
  0x1c   : > { %v613_v33 = vld [vmem:[%s2354_s4 + $0xf8] sm:$0xff]  ;;  %v454_v34 = vld [vmem:[#allocation2 + $0x8] sm:$0xff]  ;;  %v1354_v35 = vpack.c.bf16 %v608_v31, %v606_v30  ;;  %v610_v37 = vld [vmem:[%s2354_s4 + $0xe0] sm:$0xff] }
  0x1d   : > { %1319 = vmatpush1.bf16.msra.mxu0 %v1318_v61  ;;  %1343 = vmatpush1.bf16.msra.mxu1 %v1342_v12  ;;  %v1356_v36 = vpack.c.bf16 %v613_v33, %v611_v32  ;;  %v612_v38 = vld [vmem:[%s2354_s4 + $0xf0] sm:$0xff]  ;;  %v615_v39 = vld [vmem:[%s2354_s4 + $0x108] sm:$0xff]  ;;  %v617_v40 = vld [vmem:[%s2354_s4 + $0x118] sm:$0xff] }
  0x1e   : > { %1321 = vmatprep.subr.bf16.mxu0 %v1320_v1  ;;  %1345 = vmatprep.subr.bf16.mxu1 %v1344_v15  ;;  %v1358_v41 = vpack.c.bf16 %v612_v38, %v610_v37  ;;  %v1360_v42 = vpack.c.bf16 %v617_v40, %v615_v39  ;;  %v614_v43 = vld [vmem:[%s2354_s4 + $0x100] sm:$0xff]  ;;  %v616_v44 = vld [vmem:[%s2354_s4 + $0x110] sm:$0xff]  ;;  %v619_v45 = vld [vmem:[%s2354_s4 + $0x128] sm:$0xff]  ;;  %v491_v40 = vlaneseq }
  0x1f   : > { %v621_v46 = vld [vmem:[%s2354_s4 + $0x138] sm:$0xff]  ;;  %v1362_v47 = vpack.c.bf16 %v616_v44, %v614_v43  ;;  %v618_v49 = vld [vmem:[%s2354_s4 + $0x120] sm:$0xff]  ;;  %v620_v50 = vld [vmem:[%s2354_s4 + $0x130] sm:$0xff] }
  0x20   : > { %v1364_v48 = vpack.c.bf16 %v621_v46, %v619_v45  ;;  %v623_v51 = vld [vmem:[%s2354_s4 + $0x148] sm:$0xff]  ;;  %v625_v52 = vld [vmem:[%s2354_s4 + $0x158] sm:$0xff]  ;;  %v1366_v53 = vpack.c.bf16 %v620_v50, %v618_v49  ;;  %v622_v55 = vld [vmem:[%s2354_s4 + $0x140] sm:$0xff] }
  0x21   : > { %1323 = vmatpush1.bf16.msra.mxu0 %v1322_v10  ;;  %1347 = vmatpush1.bf16.msra.mxu1 %v1346_v21  ;;  %v1368_v54 = vpack.c.bf16 %v625_v52, %v623_v51  ;;  %v624_v56 = vld [vmem:[%s2354_s4 + $0x150] sm:$0xff]  ;;  %v627_v57 = vld [vmem:[%s2354_s4 + $0x168] sm:$0xff]  ;;  %v629_v58 = vld [vmem:[%s2354_s4 + $0x178] sm:$0xff] }
  0x22   : > { %1325 = vmatprep.subr.bf16.mxu0 %v1324_v13  ;;  %1349 = vmatprep.subr.bf16.mxu1 %v1348_v22  ;;  %v1370_v59 = vpack.c.bf16 %v624_v56, %v622_v55  ;;  %v1372_v60 = vpack.c.bf16 %v629_v58, %v627_v57  ;;  %v626_v61 = vld [vmem:[%s2354_s4 + $0x160] sm:$0xff]  ;;  %v628_v62 = vld [vmem:[%s2354_s4 + $0x170] sm:$0xff]  ;;  %v631_v63 = vld [vmem:[%s2354_s4 + $0x188] sm:$0xff] }
  0x23   : > { %v633_v0 = vld [vmem:[%s2354_s4 + $0x198] sm:$0xff]  ;;  %v1374_v1 = vpack.c.bf16 %v628_v62, %v626_v61  ;;  %v630_v3 = vld [vmem:[%s2354_s4 + $0x180] sm:$0xff]  ;;  %v632_v4 = vld [vmem:[%s2354_s4 + $0x190] sm:$0xff] }
  0x24   : > { %v1376_v2 = vpack.c.bf16 %v633_v0, %v631_v63  ;;  %v635_v5 = vld [vmem:[%s2354_s4 + $0x1a8] sm:$0xff]  ;;  %v637_v6 = vld [vmem:[%s2354_s4 + $0x1b8] sm:$0xff]  ;;  %v1378_v8 = vpack.c.bf16 %v632_v4, %v630_v3  ;;  %v634_v10 = vld [vmem:[%s2354_s4 + $0x1a0] sm:$0xff] }
  0x25   : > { %1327 = vmatpush1.bf16.msra.mxu0 %v1326_v20  ;;  %1351 = vmatpush1.bf16.msra.mxu1 %v1350_v28  ;;  %v1380_v9 = vpack.c.bf16 %v637_v6, %v635_v5  ;;  %v636_v11 = vld [vmem:[%s2354_s4 + $0x1b0] sm:$0xff]  ;;  %v639_v12 = vld [vmem:[%s2354_s4 + $0x1c8] sm:$0xff]  ;;  %v641_v13 = vld [vmem:[%s2354_s4 + $0x1d8] sm:$0xff] }
  0x26   : > { %1353 = vmatprep.subr.bf16.mxu1 %v1352_v29  ;;  %v1382_v14 = vpack.c.bf16 %v636_v11, %v634_v10  ;;  %v1384_v15 = vpack.c.bf16 %v641_v13, %v639_v12  ;;  %v638_v16 = vld [vmem:[%s2354_s4 + $0x1c0] sm:$0xff]  ;;  %v640_v17 = vld [vmem:[%s2354_s4 + $0x1d0] sm:$0xff]  ;;  %v643_v19 = vld [vmem:[%s2354_s4 + $0x1e8] sm:$0xff] }
  0x27   : > { %v1386_v18 = vpack.c.bf16 %v640_v17, %v638_v16  ;;  %v645_v20 = vld [vmem:[%s2354_s4 + $0x1f8] sm:$0xff]  ;;  %v642_v22 = vld [vmem:[%s2354_s4 + $0x1e0] sm:$0xff]  ;;  %v644_v23 = vld [vmem:[%s2354_s4 + $0x1f0] sm:$0xff] }
  0x28   : > { %566 = vmatmul.mubr.f32.vlgmr.msra.gmra.mrb[0].mxu0 %v453_v27  ;;  %v1388_v21 = vpack.c.bf16 %v645_v20, %v643_v19  ;;  %v1390_v24 = vpack.c.bf16 %v644_v23, %v642_v22  ;;  %v758_v25 = vld [vmem:[%s2356_s6 + $0x8] sm:$0xff]  ;;  %v760_v26 = vld [vmem:[%s2356_s6 + $0x18] sm:$0xff]  ;;  %v757_v27 = vld [vmem:[%s2356_s6] sm:$0xff] }
  0x29   : > { %571 = vmatprep.mubr.f32.mxu0 %v1543_v7  ;;  %1355 = vmatpush1.bf16.msra.mxu1 %v1354_v35  ;;  %v1392_v28 = vpack.c.bf16 %v760_v26, %v758_v25  ;;  %v759_v29 = vld [vmem:[%s2356_s6 + $0x10] sm:$0xff]  ;;  %v762_v30 = vld [vmem:[%s2356_s6 + $0x28] sm:$0xff]  ;;  %v764_v31 = vld [vmem:[%s2356_s6 + $0x38] sm:$0xff] }
  0x2a   : > { %1357 = vmatprep.subr.bf16.mxu1 %v1356_v36  ;;  %v1394_v32 = vpack.c.bf16 %v759_v29, %v757_v27  ;;  %v1396_v33 = vpack.c.bf16 %v764_v31, %v762_v30  ;;  %v763_v35 = vld [vmem:[%s2356_s6 + $0x30] sm:$0xff]  ;;  %v766_v36 = vld [vmem:[%s2356_s6 + $0x48] sm:$0xff]  ;;  %v768_v37 = vld [vmem:[%s2356_s6 + $0x58] sm:$0xff] }
  0x2b   : > { %1393 = vmatprep.subr.bf16.mxu0 %v1392_v28  ;;  %v1400_v39 = vpack.c.bf16 %v768_v37, %v766_v36  ;;  %v489_v43 = vld [vmem:[%s2353_s3] sm:$0x3]  ;;  %v770_v62 = vld [vmem:[%s2356_s6 + $0x68] sm:$0xff]  ;;  %v772_v63 = vld [vmem:[%s2356_s6 + $0x78] sm:$0xff] }
  0x2c   : > { %572 = vmatmul.mubr.f32.gmra.mrb[2].mxu0 %v454_v34  ;;  %v761_v34 = vld [vmem:[%s2356_s6 + $0x20] sm:$0xff]  ;;  %v1404_v0 = vpack.c.bf16 %v772_v63, %v770_v62  ;;  %v774_v4 = vld [vmem:[%s2356_s6 + $0x88] sm:$0xff]  ;;  %v776_v5 = vld [vmem:[%s2356_s6 + $0x98] sm:$0xff] }
  0x2d   : > { %865 = vmatprep.mubr.f32.mxu0 %v1543_v7  ;;  %1359 = vmatpush1.bf16.msra.mxu1 %v1358_v41  ;;  %v1398_v38 = vpack.c.bf16 %v763_v35, %v761_v34  ;;  %v492_v41 = vshrl.u32 %v491_v40, 7  ;;  %v1408_v6 = vpack.c.bf16 %v776_v5, %v774_v4  ;;  %v778_v11 = vld [vmem:[%s2356_s6 + $0xa8] sm:$0xff]  ;;  %v780_v12 = vld [vmem:[%s2356_s6 + $0xb8] sm:$0xff]  ;;  %v781_v20 = vld [vmem:[%s2356_s6 + $0xc0] sm:$0xff] }
  0x2e   : > { %1361 = vmatprep.subr.bf16.mxu1 %v1360_v42  ;;  %1395 = vmatpush1.bf16.msra.mxu0 %v1394_v32  ;;  %v1412_v13 = vpack.c.bf16 %v780_v12, %v778_v11  ;;  %v782_v17 = vld [vmem:[%s2356_s6 + $0xc8] sm:$0xff]  ;;  %v785_v26 = vld [vmem:[%s2356_s6 + $0xe0] sm:$0xff]  ;;  %v787_v27 = vld [vmem:[%s2356_s6 + $0xf0] sm:$0xff] }
  0x2f   : > { %1397 = vmatprep.subr.bf16.mxu0 %v1396_v33  ;;  %v1960_v42 = vsub.s32 0, %v492_v41  ;;  %v1965_v44 = vsub.s32 1, %v492_v41  ;;  %v786_v23 = vld [vmem:[%s2356_s6 + $0xe8] sm:$0xff]  ;;  %v1422_v28 = vpack.c.bf16 %v787_v27, %v785_v26  ;;  %v646_v29 = vld [vmem:[%s2355_s5] sm:$0x3]  ;;  %v455_v31 = vld [vmem:[#allocation3] sm:$0xff] }
  0x30   : > { %v745_v34 = vmul.f32 %v455_v31, %v455_v31  ;;  %v456_v37 = vld [vmem:[#allocation3 + $0x8] sm:$0xff]  ;;  %v884_v63 = vld [vmem:[%s2358_s8 + $0x10] sm:$0xff]  ;;  %v891_v5 = vld [vmem:[%s2358_s8 + $0x48] sm:$0xff] }
  0x31   : > { %1363 = vmatpush1.bf16.msra.mxu1 %v1362_v47  ;;  %v494_v45 = vrot.slane %v489_v43, %v1960_v42  ;;  %v498_v46 = vrot.slane %v489_v43, %v1965_v44  ;;  %v651_v30 = vrot.slane %v646_v29, %v1960_v42  ;;  %v655_v32 = vrot.slane %v646_v29, %v1965_v44  ;;  %v888_v4 = vld [vmem:[%s2358_s8 + $0x30] sm:$0xff]  ;;  %v895_v12 = vld [vmem:[%s2358_s8 + $0x68] sm:$0xff] }
  0x32   : > { %1365 = vmatprep.subr.bf16.mxu1 %v1364_v48  ;;  %1399 = vmatpush1.bf16.msra.mxu0 %v1398_v38  ;;  %v892_v11 = vld [vmem:[%s2358_s8 + $0x50] sm:$0xff] }
  0x33   : > { %1401 = vmatprep.subr.bf16.mxu0 %v1400_v39  ;;  %v904_v29 = vld [vmem:[%s2358_s8 + $0xb0] sm:$0xff] }
  0x35   : > { %1367 = vmatpush1.bf16.msra.mxu1 %v1366_v53 }
  0x36   : > { %1369 = vmatprep.subr.bf16.mxu1 %v1368_v54 }
  0x39   : > { %1371 = vmatpush1.bf16.msra.mxu1 %v1370_v59  ;;  %v765_v59 = vld [vmem:[%s2356_s6 + $0x40] sm:$0xff] }
  0x3a   : > { %1373 = vmatprep.subr.bf16.mxu1 %v1372_v60  ;;  %v767_v60 = vld [vmem:[%s2356_s6 + $0x50] sm:$0xff] }
  0x3b   : > { %v1402_v61 = vpack.c.bf16 %v767_v60, %v765_v59  ;;  %v883_v59 = vld [vmem:[%s2358_s8 + $0x8] sm:$0xff]  ;;  %v885_v60 = vld [vmem:[%s2358_s8 + $0x18] sm:$0xff] }
  0x3c   : > { %v1424_v62 = vpack.c.bf16 %v885_v60, %v883_v59 }
  0x3d   : > { %1375 = vmatpush1.bf16.msra.mxu1 %v1374_v1  ;;  %1403 = vmatpush1.bf16.msra.mxu0 %v1402_v61  ;;  %v769_v1 = vld [vmem:[%s2356_s6 + $0x60] sm:$0xff] }
  0x3e   : > { %1377 = vmatprep.subr.bf16.mxu1 %v1376_v2  ;;  %v771_v2 = vld [vmem:[%s2356_s6 + $0x70] sm:$0xff]  ;;  %1405 = vmatprep.subr.bf16.mxu0 %v1404_v0  ;;  %v882_v61 = vld [vmem:[%s2358_s8] sm:$0xff]  ;;  %v889_v0 = vld [vmem:[%s2358_s8 + $0x38] sm:$0xff] }
  0x3f   : > { %v1406_v3 = vpack.c.bf16 %v771_v2, %v769_v1  ;;  %v1426_v1 = vpack.c.bf16 %v884_v63, %v882_v61  ;;  %v922_v61 = vld [vmem:[%s2358_s8 + $0x140] sm:$0xff]  ;;  %v927_v63 = vld [vmem:[%s2358_s8 + $0x168] sm:$0xff] }
  0x41   : > { %1379 = vmatpush1.bf16.msra.mxu1 %v1378_v8  ;;  %1407 = vmatpush1.bf16.msra.mxu0 %v1406_v3  ;;  %v773_v8 = vld [vmem:[%s2356_s6 + $0x80] sm:$0xff] }
  0x42   : > { %1381 = vmatprep.subr.bf16.mxu1 %v1380_v9  ;;  %v775_v9 = vld [vmem:[%s2356_s6 + $0x90] sm:$0xff]  ;;  %1409 = vmatprep.subr.bf16.mxu0 %v1408_v6  ;;  %v886_v3 = vld [vmem:[%s2358_s8 + $0x20] sm:$0xff]  ;;  %v893_v6 = vld [vmem:[%s2358_s8 + $0x58] sm:$0xff] }
  0x43   : > { %v1410_v10 = vpack.c.bf16 %v775_v9, %v773_v8  ;;  %v1430_v8 = vpack.c.bf16 %v888_v4, %v886_v3  ;;  %v1432_v9 = vpack.c.bf16 %v893_v6, %v891_v5  ;;  %v928_v3 = vld [vmem:[%s2358_s8 + $0x170] sm:$0xff]  ;;  %v931_v4 = vld [vmem:[%s2358_s8 + $0x188] sm:$0xff]  ;;  %v933_v5 = vld [vmem:[%s2358_s8 + $0x198] sm:$0xff] }
  0x45   : > { %1383 = vmatpush1.bf16.msra.mxu1 %v1382_v14  ;;  %1411 = vmatpush1.bf16.msra.mxu0 %v1410_v10  ;;  %v777_v14 = vld [vmem:[%s2356_s6 + $0xa0] sm:$0xff] }
  0x46   : > { %1385 = vmatprep.subr.bf16.mxu1 %v1384_v15  ;;  %v779_v15 = vld [vmem:[%s2356_s6 + $0xb0] sm:$0xff]  ;;  %1413 = vmatprep.subr.bf16.mxu0 %v1412_v13  ;;  %v890_v10 = vld [vmem:[%s2358_s8 + $0x40] sm:$0xff]  ;;  %v897_v13 = vld [vmem:[%s2358_s8 + $0x78] sm:$0xff] }
  0x47   : > { %v1414_v16 = vpack.c.bf16 %v779_v15, %v777_v14  ;;  %v1434_v14 = vpack.c.bf16 %v892_v11, %v890_v10  ;;  %v1436_v15 = vpack.c.bf16 %v897_v13, %v895_v12  ;;  %v932_v10 = vld [vmem:[%s2358_s8 + $0x190] sm:$0xff]  ;;  %v935_v11 = vld [vmem:[%s2358_s8 + $0x1a8] sm:$0xff]  ;;  %v937_v12 = vld [vmem:[%s2358_s8 + $0x1b8] sm:$0xff] }
  0x49   : > { %1387 = vmatpush1.bf16.msra.mxu1 %v1386_v18  ;;  %1415 = vmatpush1.bf16.msra.mxu0 %v1414_v16  ;;  %v784_v18 = vld [vmem:[%s2356_s6 + $0xd8] sm:$0xff]  ;;  %v894_v16 = vld [vmem:[%s2358_s8 + $0x60] sm:$0xff] }
  0x4a   : > { %1389 = vmatprep.subr.bf16.mxu1 %v1388_v21  ;;  %v1416_v19 = vpack.c.bf16 %v784_v18, %v782_v17  ;;  %v783_v21 = vld [vmem:[%s2356_s6 + $0xd0] sm:$0xff]  ;;  %v899_v18 = vld [vmem:[%s2358_s8 + $0x88] sm:$0xff] }
  0x4b   : > { %v1418_v22 = vpack.c.bf16 %v783_v21, %v781_v20  ;;  %v896_v17 = vld [vmem:[%s2358_s8 + $0x70] sm:$0xff] }
  0x4c   : > { %1417 = vmatprep.subr.bf16.mxu0 %v1416_v19  ;;  %v901_v19 = vld [vmem:[%s2358_s8 + $0x98] sm:$0xff]  ;;  %v1438_v20 = vpack.c.bf16 %v896_v17, %v894_v16  ;;  %v936_v16 = vld [vmem:[%s2358_s8 + $0x1b0] sm:$0xff]  ;;  %v939_v17 = vld [vmem:[%s2358_s8 + $0x1c8] sm:$0xff] }
  0x4d   : > { %1391 = vmatpush1.bf16.msra.mxu1 %v1390_v24  ;;  %1419 = vmatpush1.bf16.msra.mxu0 %v1418_v22  ;;  %v788_v24 = vld [vmem:[%s2356_s6 + $0xf8] sm:$0xff]  ;;  %v1440_v21 = vpack.c.bf16 %v901_v19, %v899_v18  ;;  %v898_v22 = vld [vmem:[%s2358_s8 + $0x80] sm:$0xff] }
  0x4e   : > { %v1420_v25 = vpack.c.bf16 %v788_v24, %v786_v23  ;;  %v900_v23 = vld [vmem:[%s2358_s8 + $0x90] sm:$0xff]  ;;  %v903_v24 = vld [vmem:[%s2358_s8 + $0xa8] sm:$0xff]  ;;  %v941_v18 = vld [vmem:[%s2358_s8 + $0x1d8] sm:$0xff] }
  0x4f   : > { %v1442_v26 = vpack.c.bf16 %v900_v23, %v898_v22  ;;  %v940_v22 = vld [vmem:[%s2358_s8 + $0x1d0] sm:$0xff] }
  0x50   : > { %1421 = vmatprep.subr.bf16.mxu0 %v1420_v25  ;;  %v905_v25 = vld [vmem:[%s2358_s8 + $0xb8] sm:$0xff] }
  0x51   : > { %1423 = vmatpush1.bf16.msra.mxu0 %v1422_v28  ;;  %v1444_v27 = vpack.c.bf16 %v905_v25, %v903_v24  ;;  %v902_v28 = vld [vmem:[%s2358_s8 + $0xa0] sm:$0xff]  ;;  %v943_v24 = vld [vmem:[%s2358_s8 + $0x1e8] sm:$0xff]  ;;  %v945_v25 = vld [vmem:[%s2358_s8 + $0x1f8] sm:$0xff] }
  0x52   : > { %1425 = vmatprep.subr.bf16.mxu0 %v1424_v62  ;;  %v924_v62 = vld [vmem:[%s2358_s8 + $0x150] sm:$0xff] }
  0xfb   : > { %v567_v47 = vpop.f32.mrb[0].mxu0 }
  0xfc   : > { %v568_v48 = vadd.f32 %v567_v47, %v494_v45  ;;  %v569_v49 = vpop.f32.mrb[1].mxu0 }
  0xfd   : > { %v570_v50 = vadd.f32 %v569_v49, %v498_v46 }
  0xfe   : > { %v578_v53 = vmax.f32 %v568_v48, 0.0 }
  0xff   : > { %v573_v51 = vpop.f32.mrb[2].mxu0  ;;  %v579_v52 = vmax.f32 %v570_v50, 0.0 }
 0x100   : > { %v574_v54 = vadd.f32 %v573_v51, %v494_v45  ;;  %v575_v55 = vpop.f32.mrb[3].mxu0  ;;  %v746_v45 = vmul.f32 %v456_v37, %v456_v37 }
 0x101   : > { %v576_v56 = vadd.f32 %v575_v55, %v498_v46  ;;  %722 = vmatprep.mubr.f32.mxu1 %v579_v52 }
 0x102   : > { %723 = vmatmul.mubr.f32.vlgmr.msra.gmra.mrb[0].mxu1 %v578_v53  ;;  %v580_v58 = vmax.f32 %v574_v54, 0.0 }
 0x103   : > { %v581_v57 = vmax.f32 %v576_v56, 0.0 }
 0x105   : > { %728 = vmatprep.mubr.f32.mxu1 %v581_v57 }
 0x106   : > { %729 = vmatmul.mubr.f32.gmra.mrb[2].mxu1 %v580_v58 }
 0x1d5   : > { %v724_v33 = vpop.f32.mrb[0].mxu1 }
 0x1d6   : > { %v725_v35 = vadd.f32 %v724_v33, %v651_v30  ;;  %v726_v36 = vpop.f32.mrb[1].mxu1 }
 0x1d7   : > { %v727_v38 = vadd.f32 %v726_v36, %v655_v32  ;;  %v911_v36 = vld [vmem:[%s2358_s8 + $0xe8] sm:$0xff] }
 0x1d8   : > { %1155 = vrot.lane.b32.xlu1 %v725_v35, %s1544_s17 }
 0x1d9   : > { %v735_v39 = vmul.f32 0.5, %v727_v38  ;;  %v730_v41 = vpop.f32.mrb[2].mxu1  ;;  %v747_v43 = vadd.f32 %v745_v34, %v727_v38  ;;  %v906_v34 = vld [vmem:[%s2358_s8 + $0xc0] sm:$0xff] }
 0x1da   : > { %v731_v46 = vadd.f32 %v730_v41, %v651_v30  ;;  %v732_v47 = vpop.f32.mrb[3].mxu1  ;;  %v907_v30 = vld [vmem:[%s2358_s8 + $0xc8] sm:$0xff]  ;;  %v910_v41 = vld [vmem:[%s2358_s8 + $0xe0] sm:$0xff] }
 0x1db   : > { %v737_v48 = vmul.f32 1.442695, %v735_v39  ;;  %v733_v49 = vadd.f32 %v732_v47, %v655_v32  ;;  %749 = vadd.xlane.f32.xlu0 %v747_v43  ;;  %v1446_v32 = vpack.c.bf16 %v904_v29, %v902_v28  ;;  %v912_v43 = vld [vmem:[%s2358_s8 + $0xf0] sm:$0xff] }
 0x1dc   : > { %1157 = vrot.lane.b32.xlu1 %v731_v46, %s1544_s17  ;;  %v1454_v47 = vpack.c.bf16 %v912_v43, %v910_v41  ;;  %v944_v28 = vld [vmem:[%s2358_s8 + $0x1f0] sm:$0xff]  ;;  %v1042_v41 = vld [vmem:[%s2360_s10 + $0x18] sm:$0xff]  ;;  %v1059_v43 = vld [vmem:[%s2360_s10 + $0xa0] sm:$0xff] }
 0x1dd   : > { %1531 = vpow2.f32 %v737_v48  ;;  %v736_v50 = vmul.f32 0.5, %v733_v49  ;;  %v748_v51 = vadd.f32 %v746_v45, %v733_v49  ;;  %v915_v45 = vld [vmem:[%s2358_s8 + $0x108] sm:$0xff] }
 0x1df   : > { %v739_v52 = vmul.f32 1.442695, %v736_v50  ;;  %751 = vadd.xlane.f32.xlu0 %v748_v51  ;;  %v916_v50 = vld [vmem:[%s2358_s8 + $0x110] sm:$0xff]  ;;  %v919_v51 = vld [vmem:[%s2358_s8 + $0x128] sm:$0xff] }
 0x1e0   : > { %1163 = vrot.lane.b32.xlu1 %v733_v49, %s1545_s18  ;;  %v914_v49 = vld [vmem:[%s2358_s8 + $0x100] sm:$0xff] }
 0x1e1   : > { %1533 = vpow2.f32 %v739_v52  ;;  %v921_v52 = vld [vmem:[%s2358_s8 + $0x138] sm:$0xff] }
 0x1e7   : > { %v1532_v53 = vpop.eup %1531 }
 0x1e8   : > { %v741_v54 = vmul.f32 %v1532_v53, %v455_v31  ;;  %v909_v31 = vld [vmem:[%s2358_s8 + $0xd8] sm:$0xff]  ;;  %v1458_v53 = vpack.c.bf16 %v916_v50, %v914_v49  ;;  %v1044_v49 = vld [vmem:[%s2360_s10 + $0x28] sm:$0xff]  ;;  %v1061_v50 = vld [vmem:[%s2360_s10 + $0xb0] sm:$0xff] }
 0x1e9   : > { %v1448_v33 = vpack.c.bf16 %v909_v31, %v907_v30  ;;  %v1055_v30 = vld [vmem:[%s2360_s10 + $0x80] sm:$0xff]  ;;  %v1056_v31 = vld [vmem:[%s2360_s10 + $0x88] sm:$0xff] }
 0x1ea   : > { %v743_v55 = vadd.f32 %v741_v54, %v725_v35  ;;  %v908_v35 = vld [vmem:[%s2358_s8 + $0xd0] sm:$0xff]  ;;  %v1460_v54 = vpack.c.bf16 %v921_v52, %v919_v51  ;;  %v1062_v51 = vld [vmem:[%s2360_s10 + $0xb8] sm:$0xff] }
 0x1eb   : > { %v1534_v56 = vpop.eup %1533 }
 0x1ec   : > { %v742_v57 = vmul.f32 %v1534_v56, %v456_v37  ;;  %866 = vmatmul.mubr.f32.vlgmr.msra.gmra.mrb[4].mxu0 %v743_v55  ;;  %v913_v37 = vld [vmem:[%s2358_s8 + $0xf8] sm:$0xff]  ;;  %v918_v55 = vld [vmem:[%s2358_s8 + $0x120] sm:$0xff]  ;;  %v920_v56 = vld [vmem:[%s2358_s8 + $0x130] sm:$0xff] }
 0x1ed   : > { %871 = vmatprep.mubr.f32.mxu0 %v1543_v7  ;;  %v887_v7 = vld [vmem:[%s2358_s8 + $0x28] sm:$0xff]  ;;  %1427 = vmatpush1.bf16.msra.mxu0 %v1426_v1  ;;  %v1452_v39 = vpack.c.bf16 %v913_v37, %v911_v36  ;;  %v1462_v59 = vpack.c.bf16 %v920_v56, %v918_v55  ;;  %v1058_v36 = vld [vmem:[%s2360_s10 + $0x98] sm:$0xff]  ;;  %v1063_v56 = vld [vmem:[%s2360_s10 + $0xc0] sm:$0xff] }
 0x1ee   : > { %v744_v58 = vadd.f32 %v742_v57, %v731_v46  ;;  %v1428_v2 = vpack.c.bf16 %v889_v0, %v887_v7  ;;  %v917_v46 = vld [vmem:[%s2358_s8 + $0x118] sm:$0xff]  ;;  %v923_v57 = vld [vmem:[%s2358_s8 + $0x148] sm:$0xff]  ;;  %v1466_v0 = vpack.c.bf16 %v924_v62, %v922_v61  ;;  %v1065_v62 = vld [vmem:[%s2360_s10 + $0xd0] sm:$0xff] }
 0x1ef   : > { %v1456_v48 = vpack.c.bf16 %v917_v46, %v915_v45  ;;  %v929_v7 = vld [vmem:[%s2358_s8 + $0x178] sm:$0xff]  ;;  %v1060_v45 = vld [vmem:[%s2360_s10 + $0xa8] sm:$0xff] }
 0x1f0   : > { %872 = vmatmul.mubr.f32.gmra.mrb[6].mxu0 %v744_v58  ;;  %1429 = vmatprep.subr.bf16.mxu0 %v1428_v2  ;;  %v925_v58 = vld [vmem:[%s2358_s8 + $0x158] sm:$0xff]  ;;  %v1468_v1 = vpack.c.bf16 %v929_v7, %v927_v63  ;;  %v926_v2 = vld [vmem:[%s2358_s8 + $0x160] sm:$0xff]  ;;  %v1048_v61 = vld [vmem:[%s2360_s10 + $0x48] sm:$0xff] }
 0x1f1   : > { %1431 = vmatpush1.bf16.msra.mxu0 %v1430_v8  ;;  %v1464_v60 = vpack.c.bf16 %v925_v58, %v923_v57  ;;  %v1470_v6 = vpack.c.bf16 %v928_v3, %v926_v2  ;;  %v1472_v8 = vpack.c.bf16 %v933_v5, %v931_v4  ;;  %v1046_v55 = vld [vmem:[%s2360_s10 + $0x38] sm:$0xff]  ;;  %v1064_v57 = vld [vmem:[%s2360_s10 + $0xc8] sm:$0xff]  ;;  %v1067_v3 = vld [vmem:[%s2360_s10 + $0xe0] sm:$0xff] }
 0x1f2   : > { %1433 = vmatprep.subr.bf16.mxu0 %v1432_v9  ;;  %v930_v9 = vld [vmem:[%s2358_s8 + $0x180] sm:$0xff]  ;;  %v1066_v63 = vld [vmem:[%s2360_s10 + $0xd8] sm:$0xff]  ;;  %v1068_v4 = vld [vmem:[%s2360_s10 + $0xe8] sm:$0xff] }
 0x1f3   : > { %v1474_v13 = vpack.c.bf16 %v932_v10, %v930_v9  ;;  %v1050_v2 = vld [vmem:[%s2360_s10 + $0x58] sm:$0xff] }
 0x1f5   : > { %1161 = vrot.lane.b32.xlu0 %v727_v38, %s1545_s18  ;;  %1435 = vmatpush1.bf16.msra.mxu0 %v1434_v14  ;;  %v1450_v38 = vpack.c.bf16 %v908_v35, %v906_v34  ;;  %v1476_v14 = vpack.c.bf16 %v937_v12, %v935_v11  ;;  %v1040_v34 = vld [vmem:[%s2360_s10 + $0x8] sm:$0xff]  ;;  %v1057_v35 = vld [vmem:[%s2360_s10 + $0x90] sm:$0xff] }
 0x1f6   : > { %1437 = vmatprep.subr.bf16.mxu0 %v1436_v15  ;;  %v934_v15 = vld [vmem:[%s2358_s8 + $0x1a0] sm:$0xff] }
 0x1f7   : > { %v1478_v19 = vpack.c.bf16 %v936_v16, %v934_v15 }
 0x1f9   : > { %1439 = vmatpush1.bf16.msra.mxu0 %v1438_v20  ;;  %v1480_v20 = vpack.c.bf16 %v941_v18, %v939_v17 }
 0x1fa   : > { %1441 = vmatprep.subr.bf16.mxu0 %v1440_v21  ;;  %v938_v21 = vld [vmem:[%s2358_s8 + $0x1c0] sm:$0xff] }
 0x1fb   : > { %v1482_v23 = vpack.c.bf16 %v940_v22, %v938_v21 }
 0x1fd   : > { %1443 = vmatpush1.bf16.msra.mxu0 %v1442_v26  ;;  %v1484_v26 = vpack.c.bf16 %v945_v25, %v943_v24  ;;  %v1052_v24 = vld [vmem:[%s2360_s10 + $0x68] sm:$0xff] }
 0x1fe   : > { %1445 = vmatprep.subr.bf16.mxu0 %v1444_v27  ;;  %v942_v27 = vld [vmem:[%s2358_s8 + $0x1e0] sm:$0xff] }
 0x1ff   : > { %v1486_v29 = vpack.c.bf16 %v944_v28, %v942_v27  ;;  %v1070_v27 = vld [vmem:[%s2360_s10 + $0xf8] sm:$0xff] }
 0x201   : > { %1447 = vmatpush1.bf16.msra.mxu0 %v1446_v32  ;;  %v1039_v32 = vld [vmem:[%s2360_s10] sm:$0xff] }
 0x202   : > { %1449 = vmatprep.subr.bf16.mxu0 %v1448_v33  ;;  %v1488_v33 = vpack.c.bf16 %v1056_v31, %v1055_v30  ;;  %v1490_v37 = vpack.c.bf16 %v1040_v34, %v1039_v32  ;;  %v1054_v30 = vld [vmem:[%s2360_s10 + $0x78] sm:$0xff]  ;;  %v946_v32 = vld [vmem:[%s2359_s9] sm:$0x3] }
 0x203   : > { %v955_v34 = vrot.slane %v946_v32, %v1965_v44 }
 0x204   : > { %1489 = vmatprep.subr.bf16.mxu1 %v1488_v33  ;;  %v951_v33 = vrot.slane %v946_v32, %v1960_v42 }
 0x205   : > { %1451 = vmatpush1.bf16.msra.mxu0 %v1450_v38  ;;  %v1492_v38 = vpack.c.bf16 %v1058_v36, %v1057_v35  ;;  %1491 = vmatpush3.bf16.msra.mxu1 %v1490_v37 }
 0x206   : > { %1453 = vmatprep.subr.bf16.mxu0 %v1452_v39  ;;  %v1041_v39 = vld [vmem:[%s2360_s10 + $0x10] sm:$0xff] }
 0x207   : > { %v1494_v46 = vpack.c.bf16 %v1042_v41, %v1041_v39  ;;  %1493 = vmatprep.subr.bf16.mxu1 %v1492_v38 }
 0x209   : > { %1455 = vmatpush1.bf16.msra.mxu0 %v1454_v47  ;;  %v1496_v47 = vpack.c.bf16 %v1060_v45, %v1059_v43  ;;  %1495 = vmatpush3.bf16.msra.mxu1 %v1494_v46 }
 0x20a   : > { %1457 = vmatprep.subr.bf16.mxu0 %v1456_v48  ;;  %v1043_v48 = vld [vmem:[%s2360_s10 + $0x20] sm:$0xff] }
 0x20b   : > { %v1498_v52 = vpack.c.bf16 %v1044_v49, %v1043_v48  ;;  %1497 = vmatprep.subr.bf16.mxu1 %v1496_v47 }
 0x20d   : > { %1459 = vmatpush1.bf16.msra.mxu0 %v1458_v53  ;;  %v1500_v53 = vpack.c.bf16 %v1062_v51, %v1061_v50  ;;  %1499 = vmatpush3.bf16.msra.mxu1 %v1498_v52 }
 0x20e   : > { %1461 = vmatprep.subr.bf16.mxu0 %v1460_v54  ;;  %v1045_v54 = vld [vmem:[%s2360_s10 + $0x30] sm:$0xff] }
 0x20f   : > { %v1502_v58 = vpack.c.bf16 %v1046_v55, %v1045_v54  ;;  %1501 = vmatprep.subr.bf16.mxu1 %v1500_v53  ;;  %v1255_v53 = vld [vmem:[%s2361_s11] ss:$0 sm:$0xff]  ;;  %v1154_v55 = vand.u32 127, %v491_v40 }
 0x211   : > { %1463 = vmatpush1.bf16.msra.mxu0 %v1462_v59  ;;  %v1504_v59 = vpack.c.bf16 %v1064_v57, %v1063_v56  ;;  %1503 = vmatpush3.bf16.msra.mxu1 %v1502_v58  ;;  %vm1167_vm2 = vcmp.eq.s32.totalorder %v1154_v55, 48 }
 0x212   : > { %1465 = vmatprep.subr.bf16.mxu0 %v1464_v60  ;;  %v1047_v60 = vld [vmem:[%s2360_s10 + $0x40] sm:$0xff] }
 0x213   : > { %v1506_v7 = vpack.c.bf16 %v1048_v61, %v1047_v60  ;;  %1505 = vmatprep.subr.bf16.mxu1 %v1504_v59 }
 0x215   : > { %1467 = vmatpush1.bf16.msra.mxu0 %v1466_v0  ;;  %v1508_v0 = vpack.c.bf16 %v1066_v63, %v1065_v62  ;;  %1507 = vmatpush3.bf16.msra.mxu1 %v1506_v7 }
 0x216   : > { %1469 = vmatprep.subr.bf16.mxu0 %v1468_v1  ;;  %v1049_v1 = vld [vmem:[%s2360_s10 + $0x50] sm:$0xff] }
 0x217   : > { %v1510_v5 = vpack.c.bf16 %v1050_v2, %v1049_v1  ;;  %1509 = vmatprep.subr.bf16.mxu1 %v1508_v0 }
 0x219   : > { %1471 = vmatpush1.bf16.msra.mxu0 %v1470_v6  ;;  %v1512_v6 = vpack.c.bf16 %v1068_v4, %v1067_v3  ;;  %1511 = vmatpush3.bf16.msra.mxu1 %v1510_v5 }
 0x21a   : > { %1473 = vmatprep.subr.bf16.mxu0 %v1472_v8  ;;  %v789_v8 = vld [vmem:[%s2357_s7] sm:$0x3] }
 0x21b   : > { %1513 = vmatprep.subr.bf16.mxu1 %v1512_v6  ;;  %v794_v9 = vrot.slane %v789_v8, %v1960_v42  ;;  %v798_v10 = vrot.slane %v789_v8, %v1965_v44 }
 0x21d   : > { %1475 = vmatpush1.bf16.msra.mxu0 %v1474_v13 }
 0x21e   : > { %1477 = vmatprep.subr.bf16.mxu0 %v1476_v14 }
 0x221   : > { %1479 = vmatpush1.bf16.msra.mxu0 %v1478_v19 }
 0x222   : > { %1481 = vmatprep.subr.bf16.mxu0 %v1480_v20 }
 0x225   : > { %1483 = vmatpush1.bf16.msra.mxu0 %v1482_v23  ;;  %v1051_v23 = vld [vmem:[%s2360_s10 + $0x60] sm:$0xff] }
 0x226   : > { %1485 = vmatprep.subr.bf16.mxu0 %v1484_v26  ;;  %v1514_v25 = vpack.c.bf16 %v1052_v24, %v1051_v23  ;;  %v1069_v26 = vld [vmem:[%s2360_s10 + $0xf0] sm:$0xff] }
 0x227   : > { %v1516_v28 = vpack.c.bf16 %v1070_v27, %v1069_v26 }
 0x228   : > { %1515 = vmatpush3.bf16.msra.mxu1 %v1514_v25 }
 0x229   : > { %1487 = vmatpush1.bf16.msra.mxu0 %v1486_v29  ;;  %v1053_v29 = vld [vmem:[%s2360_s10 + $0x70] sm:$0xff]  ;;  %1517 = vmatprep.subr.bf16.mxu1 %v1516_v28 }
 0x22a   : > { %v1518_v31 = vpack.c.bf16 %v1054_v30, %v1053_v29 }
 0x22c   : > { %1519 = vmatpush3.bf16.msra.mxu1 %v1518_v31 }
 0x24a   : > { %v1156_v42 = vpop.permute.xlu1 %1155 }
 0x24e   : > { %v1158_v59 = vpop.permute.xlu1 %1157 }
 0x252   : > { %v1164_v6 = vpop.permute.xlu1 %1163 }
 0x268   : > { %v750_v50 = vpop.xlane.xlu0 %749 }
 0x269   : > { %v753_v44 = vmul.f32 -0.5, %v750_v50 }
 0x26b   : > { %v1253_v60 = vadd.f32 -9.189385, %v753_v44 }
 0x26c   : > { %v752_v52 = vpop.xlane.xlu0 %751 }
 0x26d   : > { %v754_v61 = vmul.f32 -0.5, %v752_v52  ;;  %v1168_v3 = vsel %vm1167_vm2, %v1253_v60, 0.0 }
 0x26f   : > { %v1254_v4 = vadd.f32 -9.189385, %v754_v61 }
 0x270   : > { %v1162_v0 = vpop.permute.xlu0 %1161 }
 0x2bf   : > { %v867_v11 = vpop.f32.mrb[4].mxu0 }
 0x2c0   : > { %v868_v12 = vadd.f32 %v867_v11, %v794_v9  ;;  %v869_v13 = vpop.f32.mrb[5].mxu0 }
 0x2c1   : > { %v870_v14 = vadd.f32 %v869_v13, %v798_v10 }
 0x2c2   : > { %v878_v17 = vmax.f32 %v868_v12, 0.0 }
 0x2c3   : > { %v879_v15 = vmax.f32 %v870_v14, 0.0  ;;  %v873_v16 = vpop.f32.mrb[6].mxu0 }
 0x2c4   : > { %v874_v18 = vadd.f32 %v873_v16, %v794_v9  ;;  %v875_v19 = vpop.f32.mrb[7].mxu0  ;;  %v1169_v9 = vsel %vm1167_vm2, %v1254_v4, 0.0 }
 0x2c5   : > { %v876_v20 = vadd.f32 %v875_v19, %v798_v10  ;;  %1022 = vmatprep.mubr.f32.mxu0 %v879_v15 }
 0x2c6   : > { %1023 = vmatmul.mubr.f32.vlgmr.msra.gmra.mrb[8].mxu0 %v878_v17  ;;  %v880_v22 = vmax.f32 %v874_v18, 0.0 }
 0x2c7   : > { %v881_v21 = vmax.f32 %v876_v20, 0.0 }
 0x2c9   : > { %1028 = vmatprep.mubr.f32.mxu0 %v881_v21 }
 0x2ca   : > { %1029 = vmatmul.mubr.f32.gmra.mrb[10].mxu0 %v880_v22 }
 0x399   : > { %v1024_v35 = vpop.f32.mrb[8].mxu0 }
 0x39a   : > { %v1025_v36 = vadd.f32 %v1024_v35, %v951_v33  ;;  %v1026_v37 = vpop.f32.mrb[9].mxu0 }
 0x39b   : > { %v1027_v38 = vadd.f32 %v1026_v37, %v955_v34 }
 0x39c   : > { %v1035_v43 = vmax.f32 %v1025_v36, 0.0 }
 0x39d   : > { %v1036_v39 = vmax.f32 %v1027_v38, 0.0  ;;  %v1030_v41 = vpop.f32.mrb[10].mxu0 }
 0x39e   : > { %v1031_v45 = vadd.f32 %v1030_v41, %v951_v33  ;;  %v1032_v46 = vpop.f32.mrb[11].mxu0 }
 0x39f   : > { %v1033_v47 = vadd.f32 %v1032_v46, %v955_v34  ;;  %1142 = vmatprep.mubr.f32.mxu1 %v1036_v39 }
 0x3a0   : > { %1143 = vmatmul.mubr.f32.vlgmr.msra.gmra.mrb[4].mxu1 %v1035_v43  ;;  %v1037_v49 = vmax.f32 %v1031_v45, 0.0 }
 0x3a1   : > { %v1038_v48 = vmax.f32 %v1033_v47, 0.0 }
 0x3a3   : > { %1147 = vmatprep.mubr.f32.mxu1 %v1038_v48 }
 0x3a4   : > { %1148 = vmatmul.mubr.f32.gmra.mrb[6].mxu1 %v1037_v49 }
 0x473   : > { %v1290_v51 = vpop.f32.mrb[4].mxu1 }
 0x474   : > { %v1291_v54 = vpop.f32.mrb[5].mxu1 }
 0x475   : > { %v1292_v56 = vadd.f32 %v1291_v54, %v1290_v51 }
 0x477   : > { %v1145_v57 = vadd.f32 %v1292_v56, %v1255_v53  ;;  %v1293_v58 = vpop.f32.mrb[6].mxu1 }
 0x478   : > { %v1294_v62 = vpop.f32.mrb[7].mxu1 }
 0x479   : > { %v1159_v63 = vadd.f32 %v1156_v42, %v1145_v57  ;;  %v1295_v7 = vadd.f32 %v1294_v62, %v1293_v58 }
 0x47b   : > { %v1165_v1 = vadd.f32 %v1162_v0, %v1159_v63  ;;  %v1150_v2 = vadd.f32 %v1295_v7, %v1255_v53 }
 0x47d   : > { %v1170_v40 = vadd.f32 %v1168_v3, %v1165_v1  ;;  %v1160_v5 = vadd.f32 %v1158_v59, %v1150_v2 }
 0x47f   : > { %1172 = vst [vmem:[%s437_s28] sm:$0xff] %v1170_v40  ;;  %v1166_v8 = vadd.f32 %v1164_v6, %v1160_v5 }
 0x481   : > { %v1171_v10 = vadd.f32 %v1169_v9, %v1166_v8 }
 0x483   : > { %1173 = vst [vmem:[%s437_s28 + $0x8] sm:$0xff] %v1171_v10 }
 0x484 PF: > { %s22_s21 = sadd.s32 1, %s1541_s21  }
 0x485   : > { %p19_p4 = scmp.ge.s32.totalorder %s22_s21, 4  }
 0x487   :  { %21 = sbr.rel (!%p19_p4) target bundleno = 1 (0x1), region = 101 }

</bundles_post_ra>
